<compile_context>
chip_gen: v6e
topology: v6e:2x2x1
jax: 0.10.0
libtpu: 0.0.40
codegen_flags: <defaults>
</compile_context>

<pallas_src>
import functools

import jax
import jax.numpy as jnp
from jax.experimental import pallas as pl
from jax.experimental.pallas import tpu as pltpu


def _round_up(x: int, m: int) -> int:
    return (x + m - 1) // m * m


def _fused_mlp_kernel(*refs, num_hidden: int):
    """refs = (x, w1, b_relu, [wh], w2, b2, out).

    x       [Bp, IN]              f32 input (batch padded to 8 sublanes)
    w1      [IN, H]               fc1 weight (no lane padding on H)
    b_relu  [num_hidden+1, 1, H]  stacked biases of fc1 + hidden layers
    wh      [num_hidden, H, H]    stacked hidden weights (absent if 0 hidden)
    w2      [H, OUTp]             fc2 weight, output lanes zero-padded to 128
    b2      [1, OUTp]             fc2 bias (padded)
    out     [Bp, OUTp]            lane-dense output store
    """
    if num_hidden > 0:
        x_ref, w1_ref, b_relu_ref, wh_ref, w2_ref, b2_ref, o_ref = refs
    else:
        x_ref, w1_ref, b_relu_ref, w2_ref, b2_ref, o_ref = refs
        wh_ref = None

    # fc1 + ReLU
    h = jnp.dot(x_ref[...], w1_ref[...], preferred_element_type=jnp.float32)
    h = jnp.maximum(h + b_relu_ref[0], 0.0)

    # hidden layers + ReLU (static unroll; activations stay in vregs/VMEM)
    for i in range(num_hidden):
        h = jnp.dot(h, wh_ref[i], preferred_element_type=jnp.float32)
        h = jnp.maximum(h + b_relu_ref[i + 1], 0.0)

    # fc2 (no activation)
    h = jnp.dot(h, w2_ref[...], preferred_element_type=jnp.float32) + b2_ref[...]
    o_ref[...] = h.astype(o_ref.dtype)


def prepare_params(params):
    """One-time packing/padding of the MLP parameters (hoisted OUT of the
    per-call jitted forward).

    params: list of (w [in, out], b [out]) in layer order fc1, hidden..., fc2
            (weights stored [in, out], i.e. transposed vs torch).
    Returns (prepared_dict, out_dim)."""
    assert len(params) >= 2, "need at least fc1 and fc2"
    w1, b1 = params[0]
    hidden = params[1:-1]
    w2, b2 = params[-1]
    hsize = w1.shape[1]
    out_dim = w2.shape[1]
    out_pad = _round_up(out_dim, 128)

    # Stack the ReLU-layer biases -> [nh+1, 1, H] (indexed statically in-kernel).
    b_relu = jnp.stack([b1] + [b for (_, b) in hidden]).reshape(
        len(hidden) + 1, 1, hsize)
    # Stack the hidden weights -> [nh, H, H].
    wh = jnp.stack([w for (w, _) in hidden]) if hidden else None

    # Only the FINAL layer is lane-padded (zero fill -> math unchanged) so the
    # kernel's output store is an unmasked, lane-dense vst.
    w2_p = jnp.zeros((hsize, out_pad), w2.dtype).at[:, :out_dim].set(w2)
    b2_p = jnp.zeros((1, out_pad), b2.dtype).at[0, :out_dim].set(b2)

    prepared = {"w1": w1, "b_relu": b_relu, "wh": wh, "w2": w2_p, "b2": b2_p}
    return prepared, out_dim


def fused_mlp(x_flat, prepared):
    """Run the whole MLP in a single grid-less pallas_call; intermediates
    never touch HBM."""
    wh = prepared["wh"]
    num_hidden = 0 if wh is None else wh.shape[0]
    B = x_flat.shape[0]
    out_pad = prepared["w2"].shape[1]

    # Pad only the batch to 8 sublanes with a single cheap jnp.pad; the
    # feature dim needs no padding (full-array blocks are legal and IN=1024
    # is already a lane multiple).  Zero rows are inert and sliced off below.
    B_pad = max(_round_up(B, 8), 8)
    x_p = jnp.pad(x_flat, ((0, B_pad - B), (0, 0))) if B_pad != B else x_flat

    operands = [x_p, prepared["w1"], prepared["b_relu"]]
    if num_hidden > 0:
        operands.append(wh)
    operands += [prepared["w2"], prepared["b2"]]

    vmem = pl.BlockSpec(memory_space=pltpu.MemorySpace.VMEM)
    out_p = pl.pallas_call(
        functools.partial(_fused_mlp_kernel, num_hidden=num_hidden),
        out_shape=jax.ShapeDtypeStruct((B_pad, out_pad), x_flat.dtype),
        in_specs=[vmem] * len(operands),
        out_specs=vmem,
    )(*operands)
    return out_p[:B]


@functools.partial(jax.jit, static_argnames=("out_dim",))
def nn_linear_forward(x, prepared, out_dim):
    # torch nn.Flatten: keep batch dim, flatten the rest.
    B = x.shape[0]
    h = x.reshape(B, -1)
    out_p = fused_mlp(h, prepared)
    return out_p[:, :out_dim]


def init_params(key, input_dim, output_dim, hidden_size, hidden_number):
    """Deterministic init mirroring the torch module's layer shapes
    (fc1 + (hidden_number-1) hidden layers + fc2 = hidden_number+1 Linears).
    Weights stored [in, out] so the kernel output is lane-dense."""
    dims = [input_dim] + [hidden_size] * hidden_number + [output_dim]
    params = []
    for i in range(len(dims) - 1):
        key, wk, bk = jax.random.split(key, 3)
        fan_in = dims[i]
        bound = 1.0 / jnp.sqrt(fan_in)
        w = jax.random.uniform(wk, (dims[i], dims[i + 1]), jnp.float32, -bound, bound)
        b = jax.random.uniform(bk, (dims[i + 1],), jnp.float32, -bound, bound)
        params.append((w, b))
    return params


if __name__ == "__main__":
    # Shapes consistent with the module:
    # x: [batch=2, C=4, H=16, W=16] -> input_dim = 4*16*16 = 1024
    batch, C, H, W = 2, 4, 16, 16
    input_dim = C * H * W
    hidden_size = 32
    hidden_number = 3   # fc1 + 2 hidden layers + fc2
    output_dim = 10

    key = jax.random.PRNGKey(0)
    key, xk = jax.random.split(key)
    x = jax.random.normal(xk, (batch, C, H, W), jnp.float32)

    params = init_params(key, input_dim, output_dim, hidden_size, hidden_number)

    # One-time (non-jitted, off the hot path) parameter packing/padding.
    prepared, out_dim = prepare_params(params)
    prepared = jax.tree_util.tree_map(jax.block_until_ready, prepared)

    out = nn_linear_forward(x, prepared, out_dim)
    jax.block_until_ready(out)

    # Reference check in plain JAX (same math, f32).
    h = x.reshape(batch, -1)
    for i, (w, b) in enumerate(params):
        h = h @ w + b
        if i != len(params) - 1:
            h = jnp.maximum(h, 0.0)
    assert out.shape == (batch, output_dim)
    assert jnp.allclose(out, h, atol=1e-4, rtol=1e-4)

    print("KERNEL_OK")
</pallas_src>

<mosaic_0001>
module attributes {stable_mosaic.version = 11 : i64} {
  func.func @_fused_mlp_kernel(%arg0: memref<8x1024xf32, #tpu.memory_space<vmem>>, %arg1: memref<1024x32xf32, #tpu.memory_space<vmem>>, %arg2: memref<3x1x32xf32, #tpu.memory_space<vmem>>, %arg3: memref<2x32x32xf32, #tpu.memory_space<vmem>>, %arg4: memref<32x128xf32, #tpu.memory_space<vmem>>, %arg5: memref<1x128xf32, #tpu.memory_space<vmem>>, %arg6: memref<8x128xf32, #tpu.memory_space<vmem>>) attributes {dimension_semantics = [], scalar_prefetch = 0 : i64, scratch_operands = 0 : i64, tpu.core_type = #tpu.core_type<tc>} {
    %c0 = arith.constant 0 : index
    %c0_0 = arith.constant 0 : index
    %0 = vector.load %arg0[%c0, %c0_0] : memref<8x1024xf32, #tpu.memory_space<vmem>>, vector<8x1024xf32>
    %c0_1 = arith.constant 0 : index
    %c0_2 = arith.constant 0 : index
    %1 = vector.load %arg1[%c0_1, %c0_2] : memref<1024x32xf32, #tpu.memory_space<vmem>>, vector<1024x32xf32>
    %cst = arith.constant dense<0.000000e+00> : vector<8x32xf32>
    %2 = tpu.matmul %0, %1, %cst {dimension_numbers = #tpu.dot_dimension_numbers<[1], [0], [0], [1], [0, 0, 1, 1], [], []>} : vector<8x1024xf32>, vector<1024x32xf32>, vector<8x32xf32> -> vector<8x32xf32>
    %c0_3 = arith.constant 0 : index
    %c0_4 = arith.constant 0 : index
    %c0_5 = arith.constant 0 : index
    %3 = vector.load %arg2[%c0_3, %c0_4, %c0_5] : memref<3x1x32xf32, #tpu.memory_space<vmem>>, vector<1x1x32xf32>
    %4 = vector.shape_cast %3 : vector<1x1x32xf32> to vector<1x32xf32>
    %5 = vector.broadcast %4 : vector<1x32xf32> to vector<8x32xf32>
    %6 = arith.addf %2, %5 : vector<8x32xf32>
    %cst_6 = arith.constant 0.000000e+00 : f32
    %7 = vector.broadcast %cst_6 : f32 to vector<8x32xf32>
    %8 = arith.maximumf %6, %7 : vector<8x32xf32>
    %c0_7 = arith.constant 0 : index
    %c0_8 = arith.constant 0 : index
    %c0_9 = arith.constant 0 : index
    %9 = vector.load %arg3[%c0_7, %c0_8, %c0_9] : memref<2x32x32xf32, #tpu.memory_space<vmem>>, vector<1x32x32xf32>
    %10 = vector.shape_cast %9 : vector<1x32x32xf32> to vector<32x32xf32>
    %cst_10 = arith.constant dense<0.000000e+00> : vector<8x32xf32>
    %11 = tpu.matmul %8, %10, %cst_10 {dimension_numbers = #tpu.dot_dimension_numbers<[1], [0], [0], [1], [0, 0, 1, 1], [], []>} : vector<8x32xf32>, vector<32x32xf32>, vector<8x32xf32> -> vector<8x32xf32>
    %c1 = arith.constant 1 : index
    %c0_11 = arith.constant 0 : index
    %c0_12 = arith.constant 0 : index
    %12 = vector.load %arg2[%c1, %c0_11, %c0_12] : memref<3x1x32xf32, #tpu.memory_space<vmem>>, vector<1x1x32xf32>
    %13 = vector.shape_cast %12 : vector<1x1x32xf32> to vector<1x32xf32>
    %14 = vector.broadcast %13 : vector<1x32xf32> to vector<8x32xf32>
    %15 = arith.addf %11, %14 : vector<8x32xf32>
    %cst_13 = arith.constant 0.000000e+00 : f32
    %16 = vector.broadcast %cst_13 : f32 to vector<8x32xf32>
    %17 = arith.maximumf %15, %16 : vector<8x32xf32>
    %c1_14 = arith.constant 1 : index
    %c0_15 = arith.constant 0 : index
    %c0_16 = arith.constant 0 : index
    %18 = vector.load %arg3[%c1_14, %c0_15, %c0_16] : memref<2x32x32xf32, #tpu.memory_space<vmem>>, vector<1x32x32xf32>
    %19 = vector.shape_cast %18 : vector<1x32x32xf32> to vector<32x32xf32>
    %cst_17 = arith.constant dense<0.000000e+00> : vector<8x32xf32>
    %20 = tpu.matmul %17, %19, %cst_17 {dimension_numbers = #tpu.dot_dimension_numbers<[1], [0], [0], [1], [0, 0, 1, 1], [], []>} : vector<8x32xf32>, vector<32x32xf32>, vector<8x32xf32> -> vector<8x32xf32>
    %c2 = arith.constant 2 : index
    %c0_18 = arith.constant 0 : index
    %c0_19 = arith.constant 0 : index
    %21 = vector.load %arg2[%c2, %c0_18, %c0_19] : memref<3x1x32xf32, #tpu.memory_space<vmem>>, vector<1x1x32xf32>
    %22 = vector.shape_cast %21 : vector<1x1x32xf32> to vector<1x32xf32>
    %23 = vector.broadcast %22 : vector<1x32xf32> to vector<8x32xf32>
    %24 = arith.addf %20, %23 : vector<8x32xf32>
    %cst_20 = arith.constant 0.000000e+00 : f32
    %25 = vector.broadcast %cst_20 : f32 to vector<8x32xf32>
    %26 = arith.maximumf %24, %25 : vector<8x32xf32>
    %c0_21 = arith.constant 0 : index
    %c0_22 = arith.constant 0 : index
    %27 = vector.load %arg4[%c0_21, %c0_22] : memref<32x128xf32, #tpu.memory_space<vmem>>, vector<32x128xf32>
    %cst_23 = arith.constant dense<0.000000e+00> : vector<8x128xf32>
    %28 = tpu.matmul %26, %27, %cst_23 {dimension_numbers = #tpu.dot_dimension_numbers<[1], [0], [0], [1], [0, 0, 1, 1], [], []>} : vector<8x32xf32>, vector<32x128xf32>, vector<8x128xf32> -> vector<8x128xf32>
    %c0_24 = arith.constant 0 : index
    %c0_25 = arith.constant 0 : index
    %29 = vector.load %arg5[%c0_24, %c0_25] : memref<1x128xf32, #tpu.memory_space<vmem>>, vector<1x128xf32>
    %30 = vector.broadcast %29 : vector<1x128xf32> to vector<8x128xf32>
    %31 = arith.addf %28, %30 : vector<8x128xf32>
    %c0_26 = arith.constant 0 : index
    %c0_27 = arith.constant 0 : index
    %32 = vector.load %arg6[%c0_26, %c0_27] : memref<8x128xf32, #tpu.memory_space<vmem>>, vector<8x128xf32>
    tpu.vector_store %arg6[%c0_26, %c0_27], %31 {strides = array<i32>} : memref<8x128xf32, #tpu.memory_space<vmem>>, vector<8x128xf32>,
    return
  }
}

</mosaic_0001>

<bundles_post_ra>
// kernel: nn_linear_forward.1
= control target key start
LH: loop header
LB: loop body
LE: loop exit
PB: predicated region body
PF: predicated region fallthrough
CT: control target
= control target key end

     0   :  { %vm914_vm0 = vmmov 0   ;;  %vm459_vm1 = vcmask 261120   ;;  %s1430_s1 = inlined_call_operand.vmem [shape: f32[1024,32], index: 1, kind: input, shape index: {}]   ;;  %s1431_s0 = inlined_call_operand.vmem [shape: f32[8,1024], index: 0, kind: input, shape index: {}]   ;;  %s1432_s3 = inlined_call_operand.vmem [shape: f32[2,32,32], index: 3, kind: input, shape index: {}]   ;;  %s1433_s2 = inlined_call_operand.vmem [shape: f32[3,1,32], index: 2, kind: input, shape index: {}]   ;;  %s1434_s4 = inlined_call_operand.vmem [shape: f32[32,128], index: 4, kind: input, shape index: {}]   ;;  %s1435_s5 = inlined_call_operand.vmem [shape: f32[1,128], index: 5, kind: input, shape index: {}]   ;;  %s1436_s6 = inlined_call_operand.vmem [shape: f32[8,128], index: 6, kind: output, shape index: {}]  }
   0x1   :  { %v62_v0 = vld [vmem:[%s1430_s1 + $0xf8] sm:$0xff]  ;;  %v61_v4 = vld [vmem:[%s1430_s1 + $0xf0] sm:$0xff]  ;;  %v60_v8 = vld [vmem:[%s1430_s1 + $0xe8] sm:$0xff] }
   0x2   :  { %v94_v1 = vld [vmem:[%s1430_s1 + $0x1f8] sm:$0xff]  ;;  %723 = vmatprep.subr.mxu0 %v62_v0  ;;  %v93_v5 = vld [vmem:[%s1430_s1 + $0x1f0] sm:$0xff]  ;;  %v92_v9 = vld [vmem:[%s1430_s1 + $0x1e8] sm:$0xff] }
   0x3   :  { %v46_v2 = vld [vmem:[%s1430_s1 + $0x78] sm:$0xff]  ;;  %758 = vmatprep.subr.mxu1 %v94_v1  ;;  %v45_v6 = vld [vmem:[%s1430_s1 + $0x70] sm:$0xff]  ;;  %v44_v10 = vld [vmem:[%s1430_s1 + $0x68] sm:$0xff] }
   0x4   :  { %v78_v3 = vld [vmem:[%s1430_s1 + $0x178] sm:$0xff]  ;;  %724 = vmatpush3.msra.mxu0 %v46_v2  ;;  %v77_v7 = vld [vmem:[%s1430_s1 + $0x170] sm:$0xff]  ;;  %v76_v11 = vld [vmem:[%s1430_s1 + $0x168] sm:$0xff] }
   0x5   :  { %759 = vmatpush3.msra.mxu1 %v78_v3  ;;  %725 = vmatprep.subr.mxu0 %v61_v4  ;;  %v59_v12 = vld [vmem:[%s1430_s1 + $0xe0] sm:$0xff]  ;;  %v58_v16 = vld [vmem:[%s1430_s1 + $0xd8] sm:$0xff]  ;;  %v57_v20 = vld [vmem:[%s1430_s1 + $0xd0] sm:$0xff] }
   0x6   :  { %760 = vmatprep.subr.mxu1 %v93_v5  ;;  %726 = vmatpush3.msra.mxu0 %v45_v6  ;;  %v91_v13 = vld [vmem:[%s1430_s1 + $0x1e0] sm:$0xff]  ;;  %v90_v17 = vld [vmem:[%s1430_s1 + $0x1d8] sm:$0xff]  ;;  %v89_v21 = vld [vmem:[%s1430_s1 + $0x1d0] sm:$0xff] }
   0x7   :  { %761 = vmatpush3.msra.mxu1 %v77_v7  ;;  %727 = vmatprep.subr.mxu0 %v60_v8  ;;  %v43_v14 = vld [vmem:[%s1430_s1 + $0x60] sm:$0xff]  ;;  %v42_v18 = vld [vmem:[%s1430_s1 + $0x58] sm:$0xff]  ;;  %v41_v22 = vld [vmem:[%s1430_s1 + $0x50] sm:$0xff] }
   0x8   :  { %762 = vmatprep.subr.mxu1 %v92_v9  ;;  %v75_v15 = vld [vmem:[%s1430_s1 + $0x160] sm:$0xff]  ;;  %728 = vmatpush3.msra.mxu0 %v44_v10  ;;  %v74_v19 = vld [vmem:[%s1430_s1 + $0x158] sm:$0xff]  ;;  %v73_v23 = vld [vmem:[%s1430_s1 + $0x150] sm:$0xff] }
   0x9   :  { %763 = vmatpush3.msra.mxu1 %v76_v11  ;;  %729 = vmatprep.subr.mxu0 %v59_v12  ;;  %v56_v24 = vld [vmem:[%s1430_s1 + $0xc8] sm:$0xff]  ;;  %v55_v28 = vld [vmem:[%s1430_s1 + $0xc0] sm:$0xff]  ;;  %v54_v32 = vld [vmem:[%s1430_s1 + $0xb8] sm:$0xff] }
   0xa   :  { %764 = vmatprep.subr.mxu1 %v91_v13  ;;  %730 = vmatpush3.msra.mxu0 %v43_v14  ;;  %v88_v25 = vld [vmem:[%s1430_s1 + $0x1c8] sm:$0xff]  ;;  %v87_v29 = vld [vmem:[%s1430_s1 + $0x1c0] sm:$0xff]  ;;  %v86_v33 = vld [vmem:[%s1430_s1 + $0x1b8] sm:$0xff] }
   0xb   :  { %765 = vmatpush3.msra.mxu1 %v75_v15  ;;  %731 = vmatprep.subr.mxu0 %v58_v16  ;;  %v40_v26 = vld [vmem:[%s1430_s1 + $0x48] sm:$0xff]  ;;  %v39_v30 = vld [vmem:[%s1430_s1 + $0x40] sm:$0xff]  ;;  %v38_v34 = vld [vmem:[%s1430_s1 + $0x38] sm:$0xff] }
   0xc   :  { %766 = vmatprep.subr.mxu1 %v90_v17  ;;  %732 = vmatpush3.msra.mxu0 %v42_v18  ;;  %v72_v27 = vld [vmem:[%s1430_s1 + $0x148] sm:$0xff]  ;;  %v71_v31 = vld [vmem:[%s1430_s1 + $0x140] sm:$0xff]  ;;  %v70_v35 = vld [vmem:[%s1430_s1 + $0x138] sm:$0xff] }
   0xd   :  { %767 = vmatpush3.msra.mxu1 %v74_v19  ;;  %733 = vmatprep.subr.mxu0 %v57_v20  ;;  %v53_v36 = vld [vmem:[%s1430_s1 + $0xb0] sm:$0xff]  ;;  %v52_v40 = vld [vmem:[%s1430_s1 + $0xa8] sm:$0xff]  ;;  %v51_v44 = vld [vmem:[%s1430_s1 + $0xa0] sm:$0xff] }
   0xe   :  { %768 = vmatprep.subr.mxu1 %v89_v21  ;;  %734 = vmatpush3.msra.mxu0 %v41_v22  ;;  %v85_v37 = vld [vmem:[%s1430_s1 + $0x1b0] sm:$0xff]  ;;  %v84_v41 = vld [vmem:[%s1430_s1 + $0x1a8] sm:$0xff]  ;;  %v83_v45 = vld [vmem:[%s1430_s1 + $0x1a0] sm:$0xff] }
   0xf   :  { %769 = vmatpush3.msra.mxu1 %v73_v23  ;;  %735 = vmatprep.subr.mxu0 %v56_v24  ;;  %v37_v38 = vld [vmem:[%s1430_s1 + $0x30] sm:$0xff]  ;;  %v36_v42 = vld [vmem:[%s1430_s1 + $0x28] sm:$0xff]  ;;  %v35_v46 = vld [vmem:[%s1430_s1 + $0x20] sm:$0xff] }
  0x10   :  { %770 = vmatprep.subr.mxu1 %v88_v25  ;;  %736 = vmatpush3.msra.mxu0 %v40_v26  ;;  %v69_v39 = vld [vmem:[%s1430_s1 + $0x130] sm:$0xff]  ;;  %v68_v43 = vld [vmem:[%s1430_s1 + $0x128] sm:$0xff]  ;;  %v67_v47 = vld [vmem:[%s1430_s1 + $0x120] sm:$0xff] }
  0x11   :  { %771 = vmatpush3.msra.mxu1 %v72_v27  ;;  %737 = vmatprep.subr.mxu0 %v55_v28  ;;  %v50_v48 = vld [vmem:[%s1430_s1 + $0x98] sm:$0xff]  ;;  %v49_v52 = vld [vmem:[%s1430_s1 + $0x90] sm:$0xff]  ;;  %v48_v56 = vld [vmem:[%s1430_s1 + $0x88] sm:$0xff] }
  0x12   :  { %772 = vmatprep.subr.mxu1 %v87_v29  ;;  %738 = vmatpush3.msra.mxu0 %v39_v30  ;;  %v82_v49 = vld [vmem:[%s1430_s1 + $0x198] sm:$0xff]  ;;  %v81_v53 = vld [vmem:[%s1430_s1 + $0x190] sm:$0xff]  ;;  %v80_v57 = vld [vmem:[%s1430_s1 + $0x188] sm:$0xff] }
  0x13   :  { %773 = vmatpush3.msra.mxu1 %v71_v31  ;;  %739 = vmatprep.subr.mxu0 %v54_v32  ;;  %v34_v50 = vld [vmem:[%s1430_s1 + $0x18] sm:$0xff]  ;;  %v33_v54 = vld [vmem:[%s1430_s1 + $0x10] sm:$0xff]  ;;  %v32_v58 = vld [vmem:[%s1430_s1 + $0x8] sm:$0xff] }
  0x14   :  { %774 = vmatprep.subr.mxu1 %v86_v33  ;;  %740 = vmatpush3.msra.mxu0 %v38_v34  ;;  %v66_v51 = vld [vmem:[%s1430_s1 + $0x118] sm:$0xff]  ;;  %v65_v55 = vld [vmem:[%s1430_s1 + $0x110] sm:$0xff]  ;;  %v64_v59 = vld [vmem:[%s1430_s1 + $0x108] sm:$0xff] }
  0x15   :  { %775 = vmatpush3.msra.mxu1 %v70_v35  ;;  %741 = vmatprep.subr.mxu0 %v53_v36  ;;  %v47_v60 = vld [vmem:[%s1430_s1 + $0x80] sm:$0xff]  ;;  %v24_v63 = vld [vmem:[%s1431_s0 + $0x8] sm:$0xff]  ;;  %v26_v2 = vld [vmem:[%s1431_s0 + $0x18] sm:$0xff] }
  0x16   :  { %776 = vmatprep.subr.mxu1 %v85_v37  ;;  %742 = vmatpush3.msra.mxu0 %v37_v38  ;;  %v79_v61 = vld [vmem:[%s1430_s1 + $0x180] sm:$0xff]  ;;  %v126_v3 = vld [vmem:[%s1430_s1 + $0x2f8] sm:$0xff]  ;;  %v25_v5 = vld [vmem:[%s1431_s0 + $0x10] sm:$0xff] }
  0x17   :  { %777 = vmatpush3.msra.mxu1 %v69_v39  ;;  %743 = vmatprep.subr.mxu0 %v52_v40  ;;  %v31_v62 = vld [vmem:[%s1430_s1] sm:$0xff]  ;;  %v158_v4 = vld [vmem:[%s1430_s1 + $0x3f8] sm:$0xff]  ;;  %v125_v8 = vld [vmem:[%s1430_s1 + $0x2f0] sm:$0xff] }
  0x18   :  { %778 = vmatprep.subr.mxu1 %v84_v41  ;;  %744 = vmatpush3.msra.mxu0 %v36_v42  ;;  %v63_v0 = vld [vmem:[%s1430_s1 + $0x100] sm:$0xff]  ;;  %v110_v6 = vld [vmem:[%s1430_s1 + $0x278] sm:$0xff]  ;;  %v157_v9 = vld [vmem:[%s1430_s1 + $0x3f0] sm:$0xff] }
  0x19   :  { %779 = vmatpush3.msra.mxu1 %v68_v43  ;;  %745 = vmatprep.subr.mxu0 %v51_v44  ;;  %v23_v1 = vld [vmem:[%s1431_s0] sm:$0xff]  ;;  %v142_v7 = vld [vmem:[%s1430_s1 + $0x378] sm:$0xff]  ;;  %v109_v10 = vld [vmem:[%s1430_s1 + $0x270] sm:$0xff] }
  0x1a   :  { %780 = vmatprep.subr.mxu1 %v83_v45  ;;  %746 = vmatpush3.msra.mxu0 %v35_v46  ;;  %v141_v11 = vld [vmem:[%s1430_s1 + $0x370] sm:$0xff]  ;;  %v124_v12 = vld [vmem:[%s1430_s1 + $0x2e8] sm:$0xff]  ;;  %v123_v16 = vld [vmem:[%s1430_s1 + $0x2e0] sm:$0xff] }
  0x1b   :  { %781 = vmatpush3.msra.mxu1 %v67_v47  ;;  %747 = vmatprep.subr.mxu0 %v50_v48  ;;  %v156_v13 = vld [vmem:[%s1430_s1 + $0x3e8] sm:$0xff]  ;;  %v155_v17 = vld [vmem:[%s1430_s1 + $0x3e0] sm:$0xff]  ;;  %v122_v20 = vld [vmem:[%s1430_s1 + $0x2d8] sm:$0xff] }
  0x1c   :  { %782 = vmatprep.subr.mxu1 %v82_v49  ;;  %748 = vmatpush3.msra.mxu0 %v34_v50  ;;  %v108_v14 = vld [vmem:[%s1430_s1 + $0x268] sm:$0xff]  ;;  %v107_v18 = vld [vmem:[%s1430_s1 + $0x260] sm:$0xff]  ;;  %v154_v21 = vld [vmem:[%s1430_s1 + $0x3d8] sm:$0xff] }
  0x1d   :  { %783 = vmatpush3.msra.mxu1 %v66_v51  ;;  %749 = vmatprep.subr.mxu0 %v49_v52  ;;  %v140_v15 = vld [vmem:[%s1430_s1 + $0x368] sm:$0xff]  ;;  %v139_v19 = vld [vmem:[%s1430_s1 + $0x360] sm:$0xff]  ;;  %v106_v22 = vld [vmem:[%s1430_s1 + $0x258] sm:$0xff] }
  0x1e   :  { %784 = vmatprep.subr.mxu1 %v81_v53  ;;  %750 = vmatpush3.msra.mxu0 %v33_v54  ;;  %v138_v23 = vld [vmem:[%s1430_s1 + $0x358] sm:$0xff]  ;;  %v121_v24 = vld [vmem:[%s1430_s1 + $0x2d0] sm:$0xff]  ;;  %v120_v28 = vld [vmem:[%s1430_s1 + $0x2c8] sm:$0xff] }
  0x1f   :  { %785 = vmatpush3.msra.mxu1 %v65_v55  ;;  %751 = vmatprep.subr.mxu0 %v48_v56  ;;  %v153_v25 = vld [vmem:[%s1430_s1 + $0x3d0] sm:$0xff]  ;;  %v152_v29 = vld [vmem:[%s1430_s1 + $0x3c8] sm:$0xff]  ;;  %v119_v32 = vld [vmem:[%s1430_s1 + $0x2c0] sm:$0xff] }
  0x20   :  { %786 = vmatprep.subr.mxu1 %v80_v57  ;;  %752 = vmatpush3.msra.mxu0 %v32_v58  ;;  %v105_v26 = vld [vmem:[%s1430_s1 + $0x250] sm:$0xff]  ;;  %v104_v30 = vld [vmem:[%s1430_s1 + $0x248] sm:$0xff]  ;;  %v151_v33 = vld [vmem:[%s1430_s1 + $0x3c0] sm:$0xff] }
  0x21   :  { %787 = vmatpush3.msra.mxu1 %v64_v59  ;;  %753 = vmatprep.subr.mxu0 %v47_v60  ;;  %v137_v27 = vld [vmem:[%s1430_s1 + $0x350] sm:$0xff]  ;;  %v136_v31 = vld [vmem:[%s1430_s1 + $0x348] sm:$0xff]  ;;  %v103_v34 = vld [vmem:[%s1430_s1 + $0x240] sm:$0xff] }
  0x22   :  { %788 = vmatprep.subr.mxu1 %v79_v61  ;;  %754 = vmatpush3.msra.mxu0 %v31_v62  ;;  %v135_v35 = vld [vmem:[%s1430_s1 + $0x340] sm:$0xff]  ;;  %v118_v36 = vld [vmem:[%s1430_s1 + $0x2b8] sm:$0xff]  ;;  %v117_v40 = vld [vmem:[%s1430_s1 + $0x2b0] sm:$0xff] }
  0x23   :  { %230 = vmatprep.mubr.f32.mxu0 %v24_v63  ;;  %789 = vmatpush3.msra.mxu1 %v63_v0  ;;  %v150_v37 = vld [vmem:[%s1430_s1 + $0x3b8] sm:$0xff]  ;;  %v149_v41 = vld [vmem:[%s1430_s1 + $0x3b0] sm:$0xff]  ;;  %v116_v44 = vld [vmem:[%s1430_s1 + $0x2a8] sm:$0xff] }
  0x24   :  { %231 = vmatmul.mubr.f32.vlgmr.msra.gmra.mxu0 %v23_v1  ;;  %300 = vmatprep.mubr.f32.mxu1 %v26_v2  ;;  %v102_v38 = vld [vmem:[%s1430_s1 + $0x238] sm:$0xff]  ;;  %v101_v42 = vld [vmem:[%s1430_s1 + $0x230] sm:$0xff]  ;;  %v148_v45 = vld [vmem:[%s1430_s1 + $0x3a8] sm:$0xff] }
  0x25   :  { %793 = vmatprep.subr.mxu0 %v126_v3  ;;  %828 = vmatprep.subr.mxu1 %v158_v4  ;;  %v134_v39 = vld [vmem:[%s1430_s1 + $0x338] sm:$0xff]  ;;  %v133_v43 = vld [vmem:[%s1430_s1 + $0x330] sm:$0xff]  ;;  %v100_v46 = vld [vmem:[%s1430_s1 + $0x228] sm:$0xff] }
  0x26   :  { %301 = vmatmul.mubr.f32.vlgmr.msra.gmra.mxu1 %v25_v5  ;;  %794 = vmatpush3.msra.mxu0 %v110_v6  ;;  %v132_v47 = vld [vmem:[%s1430_s1 + $0x328] sm:$0xff]  ;;  %v115_v48 = vld [vmem:[%s1430_s1 + $0x2a0] sm:$0xff]  ;;  %v114_v52 = vld [vmem:[%s1430_s1 + $0x298] sm:$0xff] }
  0x27   :  { %829 = vmatpush3.msra.mxu1 %v142_v7  ;;  %795 = vmatprep.subr.mxu0 %v125_v8  ;;  %v147_v49 = vld [vmem:[%s1430_s1 + $0x3a0] sm:$0xff]  ;;  %v146_v53 = vld [vmem:[%s1430_s1 + $0x398] sm:$0xff]  ;;  %v113_v56 = vld [vmem:[%s1430_s1 + $0x290] sm:$0xff]  ;;  %v913_v8 = vmov 0.0  }
  0x28   :  { %830 = vmatprep.subr.mxu1 %v157_v9  ;;  %796 = vmatpush3.msra.mxu0 %v109_v10  ;;  %v99_v50 = vld [vmem:[%s1430_s1 + $0x220] sm:$0xff]  ;;  %v98_v54 = vld [vmem:[%s1430_s1 + $0x218] sm:$0xff]  ;;  %v145_v57 = vld [vmem:[%s1430_s1 + $0x390] sm:$0xff] }
  0x29   :  { %831 = vmatpush3.msra.mxu1 %v141_v11  ;;  %797 = vmatprep.subr.mxu0 %v124_v12  ;;  %v131_v51 = vld [vmem:[%s1430_s1 + $0x320] sm:$0xff]  ;;  %v130_v55 = vld [vmem:[%s1430_s1 + $0x318] sm:$0xff]  ;;  %v97_v58 = vld [vmem:[%s1430_s1 + $0x210] sm:$0xff] }
  0x2a   :  { %832 = vmatprep.subr.mxu1 %v156_v13  ;;  %798 = vmatpush3.msra.mxu0 %v108_v14  ;;  %v129_v59 = vld [vmem:[%s1430_s1 + $0x310] sm:$0xff]  ;;  %v112_v60 = vld [vmem:[%s1430_s1 + $0x288] sm:$0xff]  ;;  %v111_v0 = vld [vmem:[%s1430_s1 + $0x280] sm:$0xff] }
  0x2b   :  { %833 = vmatpush3.msra.mxu1 %v140_v15  ;;  %799 = vmatprep.subr.mxu0 %v123_v16  ;;  %v144_v61 = vld [vmem:[%s1430_s1 + $0x388] sm:$0xff]  ;;  %v143_v1 = vld [vmem:[%s1430_s1 + $0x380] sm:$0xff]  ;;  %v30_v5 = vld [vmem:[%s1431_s0 + $0x38] sm:$0xff] }
  0x2c   :  { %834 = vmatprep.subr.mxu1 %v155_v17  ;;  %800 = vmatpush3.msra.mxu0 %v107_v18  ;;  %v96_v62 = vld [vmem:[%s1430_s1 + $0x208] sm:$0xff]  ;;  %v95_v2 = vld [vmem:[%s1430_s1 + $0x200] sm:$0xff]  ;;  %v29_v7 = vld [vmem:[%s1431_s0 + $0x30] sm:$0xff] }
  0x2d   :  { %835 = vmatpush3.msra.mxu1 %v139_v19  ;;  %801 = vmatprep.subr.mxu0 %v122_v20  ;;  %v128_v63 = vld [vmem:[%s1430_s1 + $0x308] sm:$0xff]  ;;  %v127_v4 = vld [vmem:[%s1430_s1 + $0x300] sm:$0xff]  ;;  %v450_v9 = vld [vmem:[%s1432_s3 + $0x18] sm:$0xff] }
  0x2e   :  { %836 = vmatprep.subr.mxu1 %v154_v21  ;;  %802 = vmatpush3.msra.mxu0 %v106_v22  ;;  %v28_v3 = vld [vmem:[%s1431_s0 + $0x28] sm:$0xff]  ;;  %v27_v6 = vld [vmem:[%s1431_s0 + $0x20] sm:$0xff]  ;;  %v449_v10 = vld [vmem:[%s1432_s3 + $0x10] sm:$0xff] }
  0x2f   :  { %837 = vmatpush3.msra.mxu1 %v138_v23  ;;  %803 = vmatprep.subr.mxu0 %v121_v24  ;;  %v448_v11 = vld [vmem:[%s1432_s3 + $0x8] sm:$0xff]  ;;  %v447_v12 = vld [vmem:[%s1432_s3] sm:$0xff]  ;;  %v717_v13 = vld [vmem:[%s1432_s3 + $0x38] sm:$0xff] }
  0x30   :  { %838 = vmatprep.subr.mxu1 %v153_v25  ;;  %804 = vmatpush3.msra.mxu0 %v105_v26  ;;  %v710_v18 = vld [vmem:[%s1433_s2] ss:$0 sm:$0xff] }
  0x31   :  { %839 = vmatpush3.msra.mxu1 %v137_v27  ;;  %805 = vmatprep.subr.mxu0 %v120_v28 }
  0x32   :  { %840 = vmatprep.subr.mxu1 %v152_v29  ;;  %806 = vmatpush3.msra.mxu0 %v104_v30 }
  0x33   :  { %841 = vmatpush3.msra.mxu1 %v136_v31  ;;  %807 = vmatprep.subr.mxu0 %v119_v32  ;;  %v716_v32 = vld [vmem:[%s1432_s3 + $0x30] sm:$0xff] }
  0x34   :  { %842 = vmatprep.subr.mxu1 %v151_v33  ;;  %808 = vmatpush3.msra.mxu0 %v103_v34  ;;  %v715_v33 = vld [vmem:[%s1432_s3 + $0x28] sm:$0xff]  ;;  %v714_v34 = vld [vmem:[%s1432_s3 + $0x20] sm:$0xff] }
  0x35   :  { %843 = vmatpush3.msra.mxu1 %v135_v35  ;;  %809 = vmatprep.subr.mxu0 %v118_v36  ;;  %v624_v35 = vld [vmem:[%s1434_s4 + $0x18] sm:$0xff]  ;;  %v712_v36 = vld [vmem:[%s1433_s2 + $0x1] ss:$0 sm:$0xff] }
  0x36   :  { %844 = vmatprep.subr.mxu1 %v150_v37  ;;  %810 = vmatpush3.msra.mxu0 %v102_v38 }
  0x37   :  { %845 = vmatpush3.msra.mxu1 %v134_v39  ;;  %811 = vmatprep.subr.mxu0 %v117_v40 }
  0x38   :  { %846 = vmatprep.subr.mxu1 %v149_v41  ;;  %812 = vmatpush3.msra.mxu0 %v101_v42  ;;  %v623_v41 = vld [vmem:[%s1434_s4 + $0x10] sm:$0xff]  ;;  %v622_v42 = vld [vmem:[%s1434_s4 + $0x8] sm:$0xff] }
  0x39   :  { %847 = vmatpush3.msra.mxu1 %v133_v43  ;;  %813 = vmatprep.subr.mxu0 %v116_v44  ;;  %v621_v43 = vld [vmem:[%s1434_s4] sm:$0xff] }
  0x3a   :  { %848 = vmatprep.subr.mxu1 %v148_v45  ;;  %814 = vmatpush3.msra.mxu0 %v100_v46  ;;  %v719_v44 = vld [vmem:[%s1433_s2 + $0x2] ss:$0 sm:$0xff] }
  0x3b   :  { %849 = vmatpush3.msra.mxu1 %v132_v47  ;;  %815 = vmatprep.subr.mxu0 %v115_v48 }
  0x3c   :  { %850 = vmatprep.subr.mxu1 %v147_v49  ;;  %816 = vmatpush3.msra.mxu0 %v99_v50  ;;  %v721_v49 = vld [vmem:[%s1435_s5] ss:$0 sm:$0xff] }
  0x3d   :  { %851 = vmatpush3.msra.mxu1 %v131_v51  ;;  %817 = vmatprep.subr.mxu0 %v114_v52 }
  0x3e   :  { %852 = vmatprep.subr.mxu1 %v146_v53  ;;  %818 = vmatpush3.msra.mxu0 %v98_v54 }
  0x3f   :  { %853 = vmatpush3.msra.mxu1 %v130_v55  ;;  %819 = vmatprep.subr.mxu0 %v113_v56 }
  0x40   :  { %854 = vmatprep.subr.mxu1 %v145_v57  ;;  %820 = vmatpush3.msra.mxu0 %v97_v58 }
  0x41   :  { %855 = vmatpush3.msra.mxu1 %v129_v59  ;;  %821 = vmatprep.subr.mxu0 %v112_v60 }
  0x42   :  { %856 = vmatprep.subr.mxu1 %v144_v61  ;;  %822 = vmatpush3.msra.mxu0 %v96_v62 }
  0x43   :  { %857 = vmatpush3.msra.mxu1 %v128_v63  ;;  %823 = vmatprep.subr.mxu0 %v111_v0 }
  0x44   :  { %858 = vmatprep.subr.mxu1 %v143_v1  ;;  %824 = vmatpush3.msra.mxu0 %v95_v2 }
  0x45   :  { %370 = vmatprep.mubr.f32.mxu0 %v28_v3  ;;  %859 = vmatpush3.msra.mxu1 %v127_v4 }
  0x46   :  { %440 = vmatprep.mubr.f32.mxu1 %v30_v5  ;;  %371 = vmatmul.mubr.f32.vlgmr.msra.gmra.mxu0 %v27_v6 }
  0x47   :  { %441 = vmatmul.mubr.f32.vlgmr.msra.gmra.mxu1 %v29_v7  ;;  %878 = vmatprep.subr.mxu0 %v913_v8 }
  0x48   :  { %889 = vmatprep.subr.mxu1 %v913_v8  ;;  %879 = vmatpush3.msra.mxu0 %v450_v9 }
  0x49   :  { %880 = vmatprep.subr.mxu0 %v913_v8  ;;  %886 = vmatprep.mubr.msk.f32.mxu0 %vm914_vm0, %v913_v8 }
  0x4a   :  { %881 = vmatpush3.msra.mxu0 %v449_v10  ;;  %897 = vmatprep.mubr.msk.f32.mxu1 %vm914_vm0, %v913_v8 }
  0x4b   :  { %882 = vmatprep.subr.mxu0 %v913_v8  ;;  %890 = vmatpush3.msra.mxu1 %v717_v13 }
  0x4c   :  { %883 = vmatpush3.msra.mxu0 %v448_v11  ;;  %891 = vmatprep.subr.mxu1 %v913_v8 }
  0x4d   :  { %884 = vmatprep.subr.mxu0 %v913_v8  ;;  %892 = vmatpush3.msra.mxu1 %v716_v32 }
  0x4e   :  { %885 = vmatpush3.msra.mxu0 %v447_v12  ;;  %893 = vmatprep.subr.mxu1 %v913_v8 }
  0x4f   :  { %900 = vmatprep.subr.mxu0 %v913_v8  ;;  %894 = vmatpush3.msra.mxu1 %v715_v33 }
  0x50   :  { %895 = vmatprep.subr.mxu1 %v913_v8 }
  0x51   :  { %896 = vmatpush3.msra.mxu1 %v714_v34 }
  0xe4   :  { %v755_v14 = vpop.f32.mrf.mxu0 }
  0xe6   :  { %v790_v15 = vpop.f32.mrf.mxu1  ;;  %v756_v16 = vpop.f32.mrf.mxu0 }
  0xe7   :  { %v757_v17 = vadd.f32 %v756_v16, %v755_v14 }
  0xe8   :  { %v791_v19 = vpop.f32.mrf.mxu1 }
  0xe9   :  { %v233_v20 = vadd.f32 %v757_v17, %v710_v18  ;;  %v792_v21 = vadd.f32 %v791_v19, %v790_v15 }
  0xeb   :  { %v303_v26 = vadd.f32 %v792_v21, %v233_v20 }
 0x106   :  { %v825_v22 = vpop.f32.mrf.mxu0 }
 0x107   :  { %v860_v23 = vpop.f32.mrf.mxu1 }
 0x108   :  { %v826_v24 = vpop.f32.mrf.mxu0 }
 0x109   :  { %v861_v25 = vpop.f32.mrf.mxu1  ;;  %v827_v27 = vadd.f32 %v826_v24, %v825_v22 }
 0x10a   :  { %v862_v29 = vadd.f32 %v861_v25, %v860_v23 }
 0x10b   :  { %v373_v28 = vadd.f32 %v827_v27, %v303_v26 }
 0x10d   :  { %v443_v30 = vadd.f32 %v862_v29, %v373_v28 }
 0x10f   :  { %v446_v31 = vmax.f32 %v443_v30, 0.0 }
 0x111   :  { %887 = vmatmul.mubr.msk.f32.vlgmr.msra.gmra.mxu0 %vm459_vm1, %v446_v31 }
 0x112   :  { %908 = vmatprep.mubr.msk.f32.mxu0 %vm914_vm0, %v913_v8  ;;  %901 = vmatpush3.msra.mxu0 %v624_v35 }
 0x113   :  { %902 = vmatprep.subr.mxu0 %v913_v8 }
 0x114   :  { %903 = vmatpush3.msra.mxu0 %v623_v41 }
 0x115   :  { %904 = vmatprep.subr.mxu0 %v913_v8 }
 0x116   :  { %905 = vmatpush3.msra.mxu0 %v622_v42 }
 0x117   :  { %906 = vmatprep.subr.mxu0 %v913_v8 }
 0x118   :  { %907 = vmatpush3.msra.mxu0 %v621_v43 }
 0x1d1   :  { %v529_v37 = vpop.f32.mrf.mxu0 }
 0x1d2   :  { %v530_v38 = vadd.f32 %v712_v36, %v529_v37 }
 0x1d3   :  { %v888_v39 = vpop.f32.mrf.mxu0 }
 0x1d4   :  { %v533_v40 = vmax.f32 %v530_v38, 0.0 }
 0x1d6   :  { %898 = vmatmul.mubr.msk.f32.vlgmr.msra.gmra.mxu1 %vm459_vm1, %v533_v40 }
 0x296   :  { %v616_v45 = vpop.f32.mrf.mxu1 }
 0x297   :  { %v617_v46 = vadd.f32 %v719_v44, %v616_v45 }
 0x298   :  { %v899_v47 = vpop.f32.mrf.mxu1 }
 0x299   :  { %v620_v48 = vmax.f32 %v617_v46, 0.0 }
 0x29b   :  { %909 = vmatmul.mubr.msk.f32.vlgmr.msra.gmra.mxu0 %vm459_vm1, %v620_v48 }
 0x35b   :  { %v701_v50 = vpop.f32.mrf.mxu0 }
 0x35c   :  { %v702_v51 = vadd.f32 %v721_v49, %v701_v50 }
 0x35d   :  { %v910_v52 = vpop.f32.mrf.mxu0 }
 0x35e   :  { %705 = vst [vmem:[%s1436_s6] sm:$0xff] %v702_v51 }

</bundles_post_ra>
